<compile_context>
chip_gen: v7x
topology: tpu7x:2x2x1
jax: 0.10.0
libtpu: 0.0.40
codegen_flags: <defaults>
</compile_context>

<pallas_src>
import jax
import jax.numpy as jnp
from jax import lax
from jax.experimental import pallas as pl
from jax.experimental.pallas import tpu as pltpu


# ----------------------------- Pallas kernel -------------------------------

def _make_kernel(h_per_image):
    H = h_per_image

    def kernel(x_ref, w1g_ref, w2_ref, s1g_ref, b1g_ref, s2_ref, b2_ref, y_ref):
        """One block of images, flattened to lane-dense row slabs.

          x_ref:   (M, W*Cin)          f32   M = images_per_block * H rows
          w1g_ref: (3*W*Cin, 2*W*C)    bf16  [conv1 | gate] columns, vertical
                                             taps stacked along K
          w2_ref:  (3*W*C,   W*C)      bf16  conv2, vertical taps along K
          s*/b*:   (1, 2*W*C)/(1, W*C) f32   folded BN scale / bias (tiled)
          y_ref:   (M, W*C)            f32
        """
        M, WCin = x_ref.shape
        WC = y_ref.shape[-1]

        x = x_ref[...]                                   # f32 identity path

        # Per-image vertical-boundary masks.  pltpu.roll wraps rows across
        # image boundaries (and around the whole block) -- exactly the rows we
        # zero here, which implements the 3x3 conv's zero padding in height.
        row = lax.broadcasted_iota(jnp.int32, (M, WCin), 0) % H
        not_top = row != 0
        not_bot = row != (H - 1)

        def im2col(a):
            # (M, K) f32 -> (M, 3K) bf16 : [row-1 | row | row+1] slabs along K.
            up = jnp.where(not_top, pltpu.roll(a, 1, axis=0), 0.0)
            dn = jnp.where(not_bot, pltpu.roll(a, M - 1, axis=0), 0.0)
            return jnp.concatenate([up, a, dn], axis=-1).astype(jnp.bfloat16)

        # conv1 (3x3) + gate conv (1x1) in one MXU dot: K = 3*W*Cin, N = 2*W*C.
        z = jnp.dot(im2col(x), w1g_ref[...], preferred_element_type=jnp.float32)
        z = z * s1g_ref[...] + b1g_ref[...]
        h = jnp.maximum(z[:, :WC], 0.0)                  # relu(BN1(conv1(x)))
        g = jax.nn.sigmoid(z[:, WC:])                    # sigmoid(BNg(gate(x)))

        # conv2 (3x3) + BN2: K = 3*W*C, N = W*C.  h never leaves VMEM/vregs.
        out = jnp.dot(im2col(h), w2_ref[...], preferred_element_type=jnp.float32)
        out = out * s2_ref[...] + b2_ref[...]

        # gated residual + relu (lane-dense, f32, full-vreg store).
        y_ref[...] = jnp.maximum(x + g * (out - x), 0.0).astype(y_ref.dtype)

    return kernel


# ------------------------------ JAX wrapper --------------------------------

def _pick_images_per_block(N, H, target_m=256):
    """Largest divisor of N with images*H <= target_m while keeping >=2 grid
    steps (so both v7x TensorCores get work)."""
    divisors = [d for d in range(1, N + 1) if N % d == 0]
    cands = [d for d in divisors
             if d * H <= max(target_m, H) and (N // d >= 2 or N == 1)]
    return max(cands) if cands else 1


def basic_block_gated(x_nchw, packed, images_per_block=None):
    N, Cin, H, W = x_nchw.shape
    K1, N1 = packed["w1g"].shape                 # (3*W*Cin, 2*W*C)
    WCin, WC = K1 // 3, N1 // 2
    assert WCin == W * Cin, "packed params do not match input width/channels"
    C = WC // W
    assert WCin == WC, "inplanes != planes needs the downsample branch (TODO)"

    if images_per_block is None:
        images_per_block = _pick_images_per_block(N, H)
    assert N % images_per_block == 0
    M_BLK = images_per_block * H                 # matmul M per grid step

    # NCHW -> lane-dense (N*H, W*Cin) row slabs (pure relayout in XLA).
    x = jnp.transpose(x_nchw, (0, 2, 3, 1)).astype(jnp.float32).reshape(N * H, WCin)

    bn1_spec = pl.BlockSpec((1, 2 * WC), lambda n: (0, 0))
    bn2_spec = pl.BlockSpec((1, WC), lambda n: (0, 0))

    y = pl.pallas_call(
        _make_kernel(H),
        out_shape=jax.ShapeDtypeStruct((N * H, WC), jnp.float32),
        grid=(N // images_per_block,),
        in_specs=[
            pl.BlockSpec((M_BLK, WCin), lambda n: (n, 0)),       # x rows
            pl.BlockSpec((3 * WCin, 2 * WC), lambda n: (0, 0)),  # conv1+gate W
            pl.BlockSpec((3 * WC, WC), lambda n: (0, 0)),        # conv2 W
            bn1_spec, bn1_spec, bn2_spec, bn2_spec,
        ],
        out_specs=pl.BlockSpec((M_BLK, WC), lambda n: (n, 0)),
        compiler_params=pltpu.CompilerParams(
            dimension_semantics=("parallel",)),   # batch blocks feed both v7x TCs
    )(x, packed["w1g"], packed["w2"],
      packed["s1g"], packed["b1g"], packed["s2"], packed["b2"])

    return jnp.transpose(y.reshape(N, H, W, C), (0, 3, 1, 2))    # back to NCHW


# ----------------------- parameter init / host-side packing ----------------

def init_params(key, inplanes, planes, eps=1e-5):
    ks = jax.random.split(key, 15)

    def bn_fold(kg, kb, km, kv, c):
        gamma = 1.0 + 0.1 * jax.random.normal(kg, (c,), jnp.float32)
        beta = 0.1 * jax.random.normal(kb, (c,), jnp.float32)
        mean = 0.1 * jax.random.normal(km, (c,), jnp.float32)
        var = jax.random.uniform(kv, (c,), jnp.float32, 0.5, 1.5)
        scale = gamma / jnp.sqrt(var + eps)
        return scale, beta - mean * scale

    w1 = jax.random.normal(ks[0], (3, 3, inplanes, planes), jnp.float32)
    w1 = w1 / jnp.sqrt(9.0 * inplanes)
    w2 = jax.random.normal(ks[1], (3, 3, planes, planes), jnp.float32)
    w2 = w2 / jnp.sqrt(9.0 * planes)
    wg = jax.random.normal(ks[2], (inplanes, planes), jnp.float32)
    wg = wg / jnp.sqrt(1.0 * inplanes)

    s1, b1 = bn_fold(ks[3], ks[4], ks[5], ks[6], planes)
    s2, b2 = bn_fold(ks[7], ks[8], ks[9], ks[10], planes)
    sg, bg = bn_fold(ks[11], ks[12], ks[13], ks[14], planes)
    return {"w1": w1, "w2": w2, "wg": wg,
            "s1": s1, "b1": b1, "s2": s2, "b2": b2, "sg": sg, "bg": bg}


def pack_params(p, W):
    """Host-side packing (done once):
      * horizontal taps + horizontal zero padding folded into banded matrices
      * the 3 vertical taps stacked along K (matches the kernel's im2col)
      * the 1x1 gate conv appended as extra output columns on the dy=1 tap
      * folded BN scale/bias tiled over W so the kernel stays lane-dense
    """
    w1, w2, wg = p["w1"], p["w2"], p["wg"]       # (3,3,ci,co) HWIO / (Cin,C)

    def band(w, dy):
        # band[(x+kx-1)*ci + i, x*co + o] = w[dy, kx, i, o]
        # (out-of-range horizontal taps drop out == zero padding in width)
        return sum(jnp.kron(jnp.eye(W, W, k=1 - kx, dtype=w.dtype), w[dy, kx])
                   for kx in range(3))

    def band_k(w):                               # -> (3*W*ci, W*co)
        return jnp.concatenate([band(w, dy) for dy in range(3)], axis=0)

    wb1 = band_k(w1)                                         # (3*W*Cin, W*C)
    wb2 = band_k(w2)                                          # (3*W*C,  W*C)
    wg_band = jnp.kron(jnp.eye(W, dtype=wg.dtype), wg)        # (W*Cin,  W*C)
    zero = jnp.zeros_like(wg_band)
    wgk = jnp.concatenate([zero, wg_band, zero], axis=0)      # gate: dy=1 only
    w1g = jnp.concatenate([wb1, wgk], axis=1)                 # (3*W*Cin, 2*W*C)

    C = w1.shape[-1]
    tile = lambda v: jnp.tile(v, W).reshape(1, W * C)
    return {
        "w1g": w1g.astype(jnp.bfloat16),
        "w2": wb2.astype(jnp.bfloat16),
        "s1g": jnp.concatenate([tile(p["s1"]), tile(p["sg"])], axis=1),
        "b1g": jnp.concatenate([tile(p["b1"]), tile(p["bg"])], axis=1),
        "s2": tile(p["s2"]), "b2": tile(p["b2"]),
    }


# ------------------------------- reference ---------------------------------

def ref_forward(x_nchw, p, mm_dtype=jnp.float32):
    """Pure-JAX reference.  mm_dtype=bfloat16 reproduces the kernel's operand
    rounding (f32 accumulation either way)."""
    x = jnp.transpose(x_nchw, (0, 2, 3, 1)).astype(jnp.float32)
    Cin, C = x.shape[-1], p["w1"].shape[-1]
    dn = ("NHWC", "HWIO", "NHWC")
    conv = lambda a, w: lax.conv_general_dilated(
        a.astype(mm_dtype), w.astype(mm_dtype), (1, 1), "SAME",
        dimension_numbers=dn, preferred_element_type=jnp.float32)
    h = jnp.maximum(conv(x, p["w1"]) * p["s1"] + p["b1"], 0.0)
    out = conv(h, p["w2"]) * p["s2"] + p["b2"]
    g = jax.nn.sigmoid(conv(x, p["wg"].reshape(1, 1, Cin, C)) * p["sg"] + p["bg"])
    y = jnp.maximum(g * out + (1.0 - g) * x, 0.0)
    return jnp.transpose(y, (0, 3, 1, 2))


# --------------------------------- main -------------------------------------

if __name__ == "__main__":
    key = jax.random.PRNGKey(0)
    kx, kp = jax.random.split(key)

    N, C, H, W = 8, 8, 16, 16            # NCHW like PyTorch; inplanes == planes
    x = jax.random.normal(kx, (N, C, H, W), jnp.float32)
    params = init_params(kp, C, C)
    packed = pack_params(params, W)      # banded / K-fused / tiled, built once

    fwd = jax.jit(lambda a: basic_block_gated(a, packed))
    y = jax.block_until_ready(fwd(x))
    assert y.shape == (N, C, H, W) and y.dtype == jnp.float32

    # tight check vs a reference with the same bf16 matmul-operand rounding
    err_bf = float(jnp.max(jnp.abs(y - ref_forward(x, params, jnp.bfloat16))))
    # loose check vs the pure-f32 module reference (bf16 quantization noise only)
    err_f32 = float(jnp.max(jnp.abs(y - ref_forward(x, params, jnp.float32))))
    assert err_bf < 3e-2, f"mismatch vs bf16-matched reference: {err_bf}"
    assert err_f32 < 2e-1, f"mismatch vs f32 reference: {err_f32}"

    print("KERNEL_OK")
</pallas_src>

<mosaic_0001>
module attributes {stable_mosaic.version = 11 : i64} {
  func.func @kernel(%arg0: i32, %arg1: memref<64x128xf32, #tpu.memory_space<vmem>>, %arg2: memref<384x256xbf16, #tpu.memory_space<vmem>>, %arg3: memref<384x128xbf16, #tpu.memory_space<vmem>>, %arg4: memref<1x256xf32, #tpu.memory_space<vmem>>, %arg5: memref<1x256xf32, #tpu.memory_space<vmem>>, %arg6: memref<1x128xf32, #tpu.memory_space<vmem>>, %arg7: memref<1x128xf32, #tpu.memory_space<vmem>>, %arg8: memref<64x128xf32, #tpu.memory_space<vmem>>) attributes {dimension_semantics = [#tpu.dimension_semantics<parallel>], iteration_bounds = array<i64: 2>, scalar_prefetch = 0 : i64, scratch_operands = 0 : i64, tpu.core_type = #tpu.core_type<tc>, window_params = [{transform_indices = @transform_0, window_bounds = array<i64: 64, 128>}, {pipeline_mode = #tpu.pipeline_mode<synchronous>, transform_indices = @transform_1, window_bounds = array<i64: 384, 256>}, {pipeline_mode = #tpu.pipeline_mode<synchronous>, transform_indices = @transform_2, window_bounds = array<i64: 384, 128>}, {pipeline_mode = #tpu.pipeline_mode<synchronous>, transform_indices = @transform_3, window_bounds = array<i64: 1, 256>}, {pipeline_mode = #tpu.pipeline_mode<synchronous>, transform_indices = @transform_4, window_bounds = array<i64: 1, 256>}, {pipeline_mode = #tpu.pipeline_mode<synchronous>, transform_indices = @transform_5, window_bounds = array<i64: 1, 128>}, {pipeline_mode = #tpu.pipeline_mode<synchronous>, transform_indices = @transform_6, window_bounds = array<i64: 1, 128>}, {transform_indices = @transform_7, window_bounds = array<i64: 64, 128>}]} {
    %c0 = arith.constant 0 : index
    %c0_0 = arith.constant 0 : index
    %0 = vector.load %arg1[%c0, %c0_0] : memref<64x128xf32, #tpu.memory_space<vmem>>, vector<64x128xf32>
    %1 = tpu.iota {dimensions = array<i32: 0>} : vector<64x128xi32>
    %c16_i32 = arith.constant 16 : i32
    %c0_i32 = arith.constant 0 : i32
    %2 = arith.cmpi eq, %c16_i32, %c0_i32 : i32
    %c1_i32 = arith.constant 1 : i32
    %3 = arith.select %2, %c1_i32, %c16_i32 : i32
    %4 = vector.broadcast %3 : i32 to vector<64x128xi32>
    %5 = arith.remsi %1, %4 : vector<64x128xi32>
    %c0_i32_1 = arith.constant 0 : i32
    %6 = vector.broadcast %c0_i32_1 : i32 to vector<64x128xi32>
    %7 = arith.cmpi ne, %5, %6 : vector<64x128xi32>
    %c0_i32_2 = arith.constant 0 : i32
    %8 = vector.broadcast %c0_i32_2 : i32 to vector<64x128xi32>
    %9 = arith.cmpi slt, %5, %8 : vector<64x128xi32>
    %c0_i32_3 = arith.constant 0 : i32
    %10 = arith.cmpi slt, %3, %c0_i32_3 : i32
    %11 = vector.broadcast %10 : i1 to vector<64x128xi1>
    %12 = vector.broadcast %11 : vector<64x128xi1> to vector<64x128xi1>
    %13 = arith.xori %9, %12 : vector<64x128xi1>
    %14 = arith.andi %13, %7 : vector<64x128xi1>
    %15 = vector.broadcast %3 : i32 to vector<64x128xi32>
    %16 = arith.addi %5, %15 : vector<64x128xi32>
    %17 = arith.select %14, %16, %5 : vector<64x128xi1>, vector<64x128xi32>
    %c0_i32_4 = arith.constant 0 : i32
    %18 = vector.broadcast %c0_i32_4 : i32 to vector<64x128xi32>
    %19 = arith.cmpi ne, %17, %18 : vector<64x128xi32>
    %c15_i32 = arith.constant 15 : i32
    %20 = vector.broadcast %c15_i32 : i32 to vector<64x128xi32>
    %21 = arith.cmpi ne, %17, %20 : vector<64x128xi32>
    %c1_i32_5 = arith.constant 1 : i32
    %22 = tpu.dynamic_rotate %0 by %c1_i32_5 dim 0 : vector<64x128xf32>, i32 -> vector<64x128xf32>
    %cst = arith.constant 0.000000e+00 : f32
    %23 = vector.broadcast %cst : f32 to vector<64x128xf32>
    %24 = arith.select %19, %22, %23 : vector<64x128xi1>, vector<64x128xf32>
    %c63_i32 = arith.constant 63 : i32
    %25 = tpu.dynamic_rotate %0 by %c63_i32 dim 0 : vector<64x128xf32>, i32 -> vector<64x128xf32>
    %cst_6 = arith.constant 0.000000e+00 : f32
    %26 = vector.broadcast %cst_6 : f32 to vector<64x128xf32>
    %27 = arith.select %21, %25, %26 : vector<64x128xi1>, vector<64x128xf32>
    %28 = tpu.concatenate %24, %0, %27 in 1 : vector<64x128xf32>, vector<64x128xf32>, vector<64x128xf32> -> vector<64x384xf32>
    %29 = arith.truncf %28 : vector<64x384xf32> to vector<64x384xbf16>
    %c0_7 = arith.constant 0 : index
    %c0_8 = arith.constant 0 : index
    %30 = vector.load %arg2[%c0_7, %c0_8] : memref<384x256xbf16, #tpu.memory_space<vmem>>, vector<384x256xbf16>
    %cst_9 = arith.constant dense<0.000000e+00> : vector<64x256xf32>
    %31 = tpu.matmul %29, %30, %cst_9 {dimension_numbers = #tpu.dot_dimension_numbers<[1], [0], [0], [1], [0, 0, 1, 1], [], []>} : vector<64x384xbf16>, vector<384x256xbf16>, vector<64x256xf32> -> vector<64x256xf32>
    %c0_10 = arith.constant 0 : index
    %c0_11 = arith.constant 0 : index
    %32 = vector.load %arg4[%c0_10, %c0_11] : memref<1x256xf32, #tpu.memory_space<vmem>>, vector<1x256xf32>
    %33 = vector.broadcast %32 : vector<1x256xf32> to vector<64x256xf32>
    %34 = arith.mulf %31, %33 : vector<64x256xf32>
    %c0_12 = arith.constant 0 : index
    %c0_13 = arith.constant 0 : index
    %35 = vector.load %arg5[%c0_12, %c0_13] : memref<1x256xf32, #tpu.memory_space<vmem>>, vector<1x256xf32>
    %36 = vector.broadcast %35 : vector<1x256xf32> to vector<64x256xf32>
    %37 = arith.addf %34, %36 : vector<64x256xf32>
    %38 = vector.extract_strided_slice %37 {offsets = [0, 0], sizes = [64, 128], strides = [1, 1]} : vector<64x256xf32> to vector<64x128xf32>
    %cst_14 = arith.constant 0.000000e+00 : f32
    %39 = vector.broadcast %cst_14 : f32 to vector<64x128xf32>
    %40 = arith.maximumf %38, %39 : vector<64x128xf32>
    %41 = vector.extract_strided_slice %37 {offsets = [0, 128], sizes = [64, 128], strides = [1, 1]} : vector<64x256xf32> to vector<64x128xf32>
    %42 = arith.negf %41 : vector<64x128xf32>
    %43 = math.exp %42 : vector<64x128xf32>
    %cst_15 = arith.constant 1.000000e+00 : f32
    %44 = vector.broadcast %cst_15 : f32 to vector<64x128xf32>
    %45 = arith.addf %44, %43 : vector<64x128xf32>
    %46 = arith.divf %44, %45 : vector<64x128xf32>
    %c1_i32_16 = arith.constant 1 : i32
    %47 = tpu.dynamic_rotate %40 by %c1_i32_16 dim 0 : vector<64x128xf32>, i32 -> vector<64x128xf32>
    %cst_17 = arith.constant 0.000000e+00 : f32
    %48 = vector.broadcast %cst_17 : f32 to vector<64x128xf32>
    %49 = arith.select %19, %47, %48 : vector<64x128xi1>, vector<64x128xf32>
    %c63_i32_18 = arith.constant 63 : i32
    %50 = tpu.dynamic_rotate %40 by %c63_i32_18 dim 0 : vector<64x128xf32>, i32 -> vector<64x128xf32>
    %cst_19 = arith.constant 0.000000e+00 : f32
    %51 = vector.broadcast %cst_19 : f32 to vector<64x128xf32>
    %52 = arith.select %21, %50, %51 : vector<64x128xi1>, vector<64x128xf32>
    %53 = tpu.concatenate %49, %40, %52 in 1 : vector<64x128xf32>, vector<64x128xf32>, vector<64x128xf32> -> vector<64x384xf32>
    %54 = arith.truncf %53 : vector<64x384xf32> to vector<64x384xbf16>
    %c0_20 = arith.constant 0 : index
    %c0_21 = arith.constant 0 : index
    %55 = vector.load %arg3[%c0_20, %c0_21] : memref<384x128xbf16, #tpu.memory_space<vmem>>, vector<384x128xbf16>
    %cst_22 = arith.constant dense<0.000000e+00> : vector<64x128xf32>
    %56 = tpu.matmul %54, %55, %cst_22 {dimension_numbers = #tpu.dot_dimension_numbers<[1], [0], [0], [1], [0, 0, 1, 1], [], []>} : vector<64x384xbf16>, vector<384x128xbf16>, vector<64x128xf32> -> vector<64x128xf32>
    %c0_23 = arith.constant 0 : index
    %c0_24 = arith.constant 0 : index
    %57 = vector.load %arg6[%c0_23, %c0_24] : memref<1x128xf32, #tpu.memory_space<vmem>>, vector<1x128xf32>
    %58 = vector.broadcast %57 : vector<1x128xf32> to vector<64x128xf32>
    %59 = arith.mulf %56, %58 : vector<64x128xf32>
    %c0_25 = arith.constant 0 : index
    %c0_26 = arith.constant 0 : index
    %60 = vector.load %arg7[%c0_25, %c0_26] : memref<1x128xf32, #tpu.memory_space<vmem>>, vector<1x128xf32>
    %61 = vector.broadcast %60 : vector<1x128xf32> to vector<64x128xf32>
    %62 = arith.addf %59, %61 : vector<64x128xf32>
    %63 = arith.subf %62, %0 : vector<64x128xf32>
    %64 = arith.mulf %46, %63 : vector<64x128xf32>
    %65 = arith.addf %0, %64 : vector<64x128xf32>
    %cst_27 = arith.constant 0.000000e+00 : f32
    %66 = vector.broadcast %cst_27 : f32 to vector<64x128xf32>
    %67 = arith.maximumf %65, %66 : vector<64x128xf32>
    %c0_28 = arith.constant 0 : index
    %c0_29 = arith.constant 0 : index
    %68 = vector.load %arg8[%c0_28, %c0_29] : memref<64x128xf32, #tpu.memory_space<vmem>>, vector<64x128xf32>
    tpu.vector_store %arg8[%c0_28, %c0_29], %67 {strides = array<i32>} : memref<64x128xf32, #tpu.memory_space<vmem>>, vector<64x128xf32>,
    return
  }
  func.func @transform_0(%arg0: i32) -> (i32, i32) {
    %c0_i32 = arith.constant 0 : i32
    %c0_i32_0 = arith.constant 0 : i32
    return %arg0, %c0_i32 : i32, i32
  }
  func.func @transform_1(%arg0: i32) -> (i32, i32) {
    %c0_i32 = arith.constant 0 : i32
    %c0_i32_0 = arith.constant 0 : i32
    %c0_i32_1 = arith.constant 0 : i32
    return %c0_i32, %c0_i32_0 : i32, i32
  }
  func.func @transform_2(%arg0: i32) -> (i32, i32) {
    %c0_i32 = arith.constant 0 : i32
    %c0_i32_0 = arith.constant 0 : i32
    %c0_i32_1 = arith.constant 0 : i32
    return %c0_i32, %c0_i32_0 : i32, i32
  }
  func.func @transform_3(%arg0: i32) -> (i32, i32) {
    %c0_i32 = arith.constant 0 : i32
    %c0_i32_0 = arith.constant 0 : i32
    %c0_i32_1 = arith.constant 0 : i32
    return %c0_i32, %c0_i32_0 : i32, i32
  }
  func.func @transform_4(%arg0: i32) -> (i32, i32) {
    %c0_i32 = arith.constant 0 : i32
    %c0_i32_0 = arith.constant 0 : i32
    %c0_i32_1 = arith.constant 0 : i32
    return %c0_i32, %c0_i32_0 : i32, i32
  }
  func.func @transform_5(%arg0: i32) -> (i32, i32) {
    %c0_i32 = arith.constant 0 : i32
    %c0_i32_0 = arith.constant 0 : i32
    %c0_i32_1 = arith.constant 0 : i32
    return %c0_i32, %c0_i32_0 : i32, i32
  }
  func.func @transform_6(%arg0: i32) -> (i32, i32) {
    %c0_i32 = arith.constant 0 : i32
    %c0_i32_0 = arith.constant 0 : i32
    %c0_i32_1 = arith.constant 0 : i32
    return %c0_i32, %c0_i32_0 : i32, i32
  }
  func.func @transform_7(%arg0: i32) -> (i32, i32) {
    %c0_i32 = arith.constant 0 : i32
    %c0_i32_0 = arith.constant 0 : i32
    return %arg0, %c0_i32 : i32, i32
  }
}

</mosaic_0001>

<bundles_post_ra>
// kernel: _lambda_.1
= control target key start
LH: loop header
LB: loop body
LE: loop exit
PB: predicated region body
PF: predicated region fallthrough
CT: control target
= control target key end

     0   :  { %s1967_s24 = smov 0   ;;  %s2631_s0 = inlined_call_operand.vmem [shape: f32[128,128], index: 0, kind: input, shape index: {}]   ;;  %s2632_s1 = inlined_call_operand.vmem [shape: bf16[384,256], index: 1, kind: input, shape index: {}]   ;;  %s2633_s2 = inlined_call_operand.vmem [shape: bf16[384,128], index: 2, kind: input, shape index: {}]   ;;  %s2634_s3 = inlined_call_operand.vmem [shape: f32[1,256], index: 3, kind: input, shape index: {}]   ;;  %s2635_s4 = inlined_call_operand.vmem [shape: f32[1,256], index: 4, kind: input, shape index: {}]   ;;  %s2636_s5 = inlined_call_operand.vmem [shape: f32[1,128], index: 5, kind: input, shape index: {}]   ;;  %s2637_s6 = inlined_call_operand.vmem [shape: f32[1,128], index: 6, kind: input, shape index: {}]   ;;  %s2638_s7 = inlined_call_operand.vmem [shape: f32[128,128], index: 7, kind: output, shape index: {}]  }
   0x1 LB: > { %s1528_s25 = sadd.s32 4294967295, %s1923_s24   ;;  %p1532_p0 = scmp.ge.s32.totalorder %s1923_s24, 1  ;;  %s1923_s24 = sphi %s1967_s24, %s17_s24  }
   0x2   : > { %p238_p1 = scmp.lt.s32.totalorder %s1923_s24, 3 }
   0x4   : > { %p239_p2 = pnand %p1532_p0, %p238_p1 }
   0x5   : > { %v1787_v0 = vld [vmem:[%s2632_s1 + $0x4] ss:$8 sps:$4 sm:$0xff] (!%p239_p2)   ;;  %v1789_v1 = vld [vmem:[%s2632_s1] ss:$8 sps:$4 sm:$0xff] (!%p239_p2)   ;;  %v1925_v2 = vmov (!%p239_p2), 0   ;;  %s1533_s12 = sshll.u32 (!%p239_p2), %s1528_s25, 3  ;;  %v291_v21 = vlaneseq (!%p239_p2) }
   0x6   : > { %242 = sbr.rel (%p239_p2) target bundleno = 583 (0x247), region = 48  ;;  %867 = vmatprep.mubr.bf16.mxu1 (!%p239_p2), %v1925_v2  ;;  %762 = vmatprep.subr.bf16.mxu0 (!%p239_p2), %v1787_v0  ;;  %v1790_v3 = vld [vmem:[%s2632_s1 + $0x14] ss:$8 sps:$4 sm:$0xff] (!%p239_p2)   ;;  %v1792_v4 = vld [vmem:[%s2632_s1 + $0x10] ss:$8 sps:$4 sm:$0xff] (!%p239_p2)   ;;  %p271_p3 = scmp.lt.s32.totalorder (!%p239_p2), %s1533_s12, 15 }
   0x7   : > { %763 = vmatpush1.bf16.msra.mxu0 (!%p239_p2), %v1789_v1  ;;  %v1793_v5 = vld [vmem:[%s2632_s1 + $0x24] ss:$8 sps:$4 sm:$0xff] (!%p239_p2)   ;;  %v1795_v6 = vld [vmem:[%s2632_s1 + $0x20] ss:$8 sps:$4 sm:$0xff] (!%p239_p2)   ;;  %v1796_v7 = vld [vmem:[%s2632_s1 + $0x34] ss:$8 sps:$4 sm:$0xff] (!%p239_p2)  }
   0x8   : > { %764 = vmatprep.subr.bf16.mxu0 (!%p239_p2), %v1790_v3  ;;  %v1798_v8 = vld [vmem:[%s2632_s1 + $0x30] ss:$8 sps:$4 sm:$0xff] (!%p239_p2)   ;;  %v1811_v9 = vld [vmem:[%s2632_s1 + $0x104] ss:$8 sps:$4 sm:$0xff] (!%p239_p2)   ;;  %v1813_v10 = vld [vmem:[%s2632_s1 + $0x100] ss:$8 sps:$4 sm:$0xff] (!%p239_p2)  }
   0x9   : > { %v1799_v11 = vld [vmem:[%s2632_s1 + $0x44] ss:$8 sps:$4 sm:$0xff] (!%p239_p2)   ;;  %835 = vmatprep.subr.bf16.mxu1 (!%p239_p2), %v1811_v9  ;;  %v1817_v12 = vld [vmem:[%s2632_s1 + $0x114] ss:$8 sps:$4 sm:$0xff] (!%p239_p2)   ;;  %v1819_v13 = vld [vmem:[%s2632_s1 + $0x110] ss:$8 sps:$4 sm:$0xff] (!%p239_p2)  }
   0xa   : > { %836 = vmatpush1.bf16.msra.mxu1 (!%p239_p2), %v1813_v10  ;;  %v1801_v14 = vld [vmem:[%s2632_s1 + $0x40] ss:$8 sps:$4 sm:$0xff] (!%p239_p2)   ;;  %v1802_v15 = vld [vmem:[%s2632_s1 + $0x54] ss:$8 sps:$4 sm:$0xff] (!%p239_p2)   ;;  %v1823_v16 = vld [vmem:[%s2632_s1 + $0x124] ss:$8 sps:$4 sm:$0xff] (!%p239_p2)  }
   0xb   : > { %765 = vmatpush1.bf16.msra.mxu0 (!%p239_p2), %v1792_v4  ;;  %837 = vmatprep.subr.bf16.mxu1 (!%p239_p2), %v1817_v12  ;;  %v1825_v17 = vld [vmem:[%s2632_s1 + $0x120] ss:$8 sps:$4 sm:$0xff] (!%p239_p2)   ;;  %v1804_v18 = vld [vmem:[%s2632_s1 + $0x50] ss:$8 sps:$4 sm:$0xff] (!%p239_p2)   ;;  %v1829_v19 = vld [vmem:[%s2632_s1 + $0x134] ss:$8 sps:$4 sm:$0xff] (!%p239_p2)  }
   0xc   : > { %766 = vmatprep.subr.bf16.mxu0 (!%p239_p2), %v1793_v5  ;;  %v1805_v20 = vld [vmem:[%s2632_s1 + $0x64] ss:$8 sps:$4 sm:$0xff] (!%p239_p2)   ;;  %v1831_v22 = vld [vmem:[%s2632_s1 + $0x130] ss:$8 sps:$4 sm:$0xff] (!%p239_p2)   ;;  %v1807_v23 = vld [vmem:[%s2632_s1 + $0x60] ss:$8 sps:$4 sm:$0xff] (!%p239_p2)  }
   0xd   : > { %s2660_s12 = smov (!%p271_p3, %s1533_s12), 15  ;;  %v1835_v24 = vld [vmem:[%s2632_s1 + $0x144] ss:$8 sps:$4 sm:$0xff]   ;;  %v1808_v25 = vld [vmem:[%s2632_s1 + $0x74] ss:$8 sps:$4 sm:$0xff]   ;;  %v2052_v26 = vshrl.u32 %v291_v21, 7 }
   0xe   : > { %838 = vmatpush1.bf16.msra.mxu1 %v1819_v13  ;;  %v1837_v27 = vld [vmem:[%s2632_s1 + $0x140] ss:$8 sps:$4 sm:$0xff]   ;;  %s1534_s11 = sshll.u32 %s2660_s12, 3  ;;  %v1810_v28 = vld [vmem:[%s2632_s1 + $0x70] ss:$8 sps:$4 sm:$0xff]   ;;  %vm1926_vm3 = vmmov 1  }
   0xf   : > { %767 = vmatpush1.bf16.msra.mxu0 %v1795_v6  ;;  %839 = vmatprep.subr.bf16.mxu1 %v1823_v16  ;;  %v1841_v29 = vld [vmem:[%s2632_s1 + $0x154] ss:$8 sps:$4 sm:$0xff]   ;;  %v1814_v30 = vld [vmem:[%s2632_s1 + $0x84] ss:$8 sps:$4 sm:$0xff]   ;;  %s2072_s20 = scalar_lea.vmem %s2631_s0, %s1534_s11  ;;  %v293_v31 = vadd.s32 8, %v2052_v26  ;;  %v295_v34 = vadd.s32 24, %v2052_v26  ;;  %s2594_s26 = scalar_lea.vmem %s2638_s7, %s1534_s11 }
  0x10   : > { %768 = vmatprep.subr.bf16.mxu0 %v1796_v7  ;;  %v1816_v32 = vld [vmem:[%s2632_s1 + $0x80] ss:$8 sps:$4 sm:$0xff]   ;;  %v1843_v33 = vld [vmem:[%s2632_s1 + $0x150] ss:$8 sps:$4 sm:$0xff]   ;;  %v1820_v35 = vld [vmem:[%s2632_s1 + $0x94] ss:$8 sps:$4 sm:$0xff]  }
  0x11   : > { %v1847_v36 = vld [vmem:[%s2632_s1 + $0x164] ss:$8 sps:$4 sm:$0xff]   ;;  %v2095_v39 = vld [vmem:[%s2072_s20 + $0x10] sm:$0xff]  ;;  %v311_v41 = vand.u32 15, %v293_v31  ;;  %vm445_vm0 = vcmp.lt.s32.totalorder %v2052_v26, 7  ;;  %v297_v43 = vadd.s32 40, %v2052_v26 }
  0x12   : > { %840 = vmatpush1.bf16.msra.mxu1 %v1825_v17  ;;  %v2089_v37 = vld [vmem:[%s2072_s20] sm:$0xff]  ;;  %v2092_v38 = vld [vmem:[%s2072_s20 + $0x8] sm:$0xff]  ;;  %v1822_v40 = vld [vmem:[%s2632_s1 + $0x90] ss:$8 sps:$4 sm:$0xff]   ;;  %v439_v47 = vrot.slane %v2095_v39, 1  ;;  %v325_v48 = vand.u32 15, %v295_v34 }
  0x13   : > { %769 = vmatpush1.bf16.msra.mxu0 %v1798_v8  ;;  %841 = vmatprep.subr.bf16.mxu1 %v1829_v19  ;;  %v463_v42 = vpack.c.bf16 %v2092_v38, %v2089_v37  ;;  %v1849_v44 = vld [vmem:[%s2632_s1 + $0x160] ss:$8 sps:$4 sm:$0xff]   ;;  %v437_v45 = vrot.slane %v2089_v37, 1  ;;  %v438_v46 = vrot.slane %v2092_v38, 1  ;;  %v1826_v49 = vld [vmem:[%s2632_s1 + $0xa4] ss:$8 sps:$4 sm:$0xff]  }
  0x14   : > { %770 = vmatprep.subr.bf16.mxu0 %v1799_v11  ;;  %v1853_v50 = vld [vmem:[%s2632_s1 + $0x174] ss:$8 sps:$4 sm:$0xff]   ;;  %v1855_v51 = vld [vmem:[%s2632_s1 + $0x170] ss:$8 sps:$4 sm:$0xff]   ;;  %v1828_v53 = vld [vmem:[%s2632_s1 + $0xa0] ss:$8 sps:$4 sm:$0xff]  }
  0x15   : > { %794 = vmatprep.mubr.bf16.mxu0 %v463_v42  ;;  %v2120_v52 = vld [vmem:[%s2072_s20 + $0x18] sm:$0xff]  ;;  %vm405_vm1 = vcmp.ne.s32.totalorder %v311_v41, 15  ;;  %v2126_v54 = vld [vmem:[%s2072_s20 + $0x20] sm:$0xff]  ;;  %v451_v56 = vsel %vm445_vm0, %v438_v46, %v439_v47  ;;  %v452_v57 = vsel %vm445_vm0, %v437_v45, %v438_v46  ;;  %v2138_v58 = vld [vmem:[%s2072_s20 + $0x28] sm:$0xff]  ;;  %v339_v59 = vand.u32 15, %v297_v43 }
  0x16   : > { %842 = vmatpush1.bf16.msra.mxu1 %v1831_v22  ;;  %v1832_v55 = vld [vmem:[%s2632_s1 + $0xb4] ss:$8 sps:$4 sm:$0xff]   ;;  %vm407_vm2 = vcmp.ne.s32.totalorder %v325_v48, 15  ;;  %vm2144_vm4 = vmpackc.low %vm405_vm1, %vm1926_vm3  ;;  %v440_v62 = vrot.slane %v2120_v52, 1  ;;  %v441_v63 = vrot.slane %v2126_v54, 1  ;;  %v1598_v1 = vpack.c.bf16 %v451_v56, %v452_v57 }
  0x17   : > { %771 = vmatpush1.bf16.msra.mxu0 %v1801_v14  ;;  %843 = vmatprep.subr.bf16.mxu1 %v1835_v24  ;;  %v2141_v60 = vld [vmem:[%s2072_s20 + $0x30] sm:$0xff]  ;;  %v1838_v3 = vld [vmem:[%s2632_s1 + $0xc4] ss:$8 sps:$4 sm:$0xff]   ;;  %vm2157_vm5 = vmpackc.low %vm407_vm2, %vm1926_vm3  ;;  %v442_v5 = vrot.slane %v2138_v58, 1  ;;  %vm409_vm6 = vcmp.ne.s32.totalorder %v339_v59, 15  ;;  %v413_v19 = vrot.slane %v2092_v38, 7 }
  0x18   : > { %772 = vmatprep.subr.bf16.mxu0 %v1802_v15  ;;  %v1834_v0 = vld [vmem:[%s2632_s1 + $0xb0] ss:$8 sps:$4 sm:$0xff]   ;;  %v443_v6 = vrot.slane %v2141_v60, 1  ;;  %v1840_v7 = vld [vmem:[%s2632_s1 + $0xc0] ss:$8 sps:$4 sm:$0xff]   ;;  %v449_v9 = vsel %vm445_vm0, %v440_v62, %v441_v63  ;;  %v450_v10 = vsel %vm445_vm0, %v439_v47, %v440_v62  ;;  %v299_v21 = vadd.s32 56, %v2052_v26  ;;  %vm2205_vm8 = vmpackc.low %vm409_vm6, %vm1926_vm3 }
  0x19   : > { %v1844_v8 = vld [vmem:[%s2632_s1 + $0xd4] ss:$8 sps:$4 sm:$0xff]   ;;  %v1846_v11 = vld [vmem:[%s2632_s1 + $0xd0] ss:$8 sps:$4 sm:$0xff]   ;;  %v1601_v12 = vpack.c.bf16 %v449_v9, %v450_v10  ;;  %v1850_v13 = vld [vmem:[%s2632_s1 + $0xe4] ss:$8 sps:$4 sm:$0xff]   ;;  %v448_v16 = vsel %vm445_vm0, %v441_v63, %v442_v5 }
  0x1a   : > { %844 = vmatpush1.bf16.msra.mxu1 %v1837_v27  ;;  %v2183_v14 = vld [vmem:[%s2072_s20 + $0x38] sm:$0xff]  ;;  %v447_v15 = vsel %vm445_vm0, %v442_v5, %v443_v6  ;;  %v1852_v17 = vld [vmem:[%s2632_s1 + $0xe0] ss:$8 sps:$4 sm:$0xff]   ;;  %vm420_vm7 = vcmp.lt.s32.totalorder %v2052_v26, 1  ;;  %v353_v31 = vand.u32 15, %v299_v21  ;;  %v414_v41 = vrot.slane %v2095_v39, 7 }
  0x1b   : > { %773 = vmatpush1.bf16.msra.mxu0 %v1804_v18  ;;  %845 = vmatprep.subr.bf16.mxu1 %v1841_v29  ;;  %v412_v18 = vrot.slane %v2089_v37, 7  ;;  %v1856_v22 = vld [vmem:[%s2632_s1 + $0xf4] ss:$8 sps:$4 sm:$0xff]   ;;  %v1604_v24 = vpack.c.bf16 %v447_v15, %v448_v16  ;;  %v444_v27 = vrot.slane %v2183_v14, 1  ;;  %v296_v47 = vadd.s32 32, %v2052_v26  ;;  %v2290_v9 = vld [vmem:[%s2633_s2 + $0x80] sm:$0xff]  }
  0x1c   : > { %774 = vmatprep.subr.bf16.mxu0 %v1805_v20  ;;  %v419_v20 = vrot.slane %v2183_v14, 7  ;;  %vm411_vm11 = vcmp.ne.s32.totalorder %v353_v31, 15  ;;  %v426_v46 = vsel %vm420_vm7, %v413_v19, %v414_v41  ;;  %v298_v59 = vadd.s32 48, %v2052_v26  ;;  %v2297_v10 = vld [vmem:[%s2633_s2 + $0x88] sm:$0xff]   ;;  %v2317_v15 = vld [vmem:[%s2633_s2 + $0x98] sm:$0xff]  }
  0x1d   : > { %v427_v29 = vsel %vm420_vm7, %v412_v18, %v413_v19  ;;  %v446_v34 = vsel %vm445_vm0, %v443_v6, %v444_v27  ;;  %vm2239_vm12 = vmpackc.low %vm411_vm11, %vm1926_vm3  ;;  %v1865_v16 = vld [vmem:[%s2633_s2 + $0x48] sm:$0xff]   ;;  %v1868_v19 = vld [vmem:[%s2633_s2 + $0x50] sm:$0xff]  }
  0x1e   : > { %846 = vmatpush1.bf16.msra.mxu1 %v1843_v33  ;;  %v2343_v21 = vld [vmem:[%s2633_s2 + $0xa8] sm:$0xff]  }
  0x1f   : > { %775 = vmatpush1.bf16.msra.mxu0 %v1807_v23  ;;  %847 = vmatprep.subr.bf16.mxu1 %v1847_v36  ;;  %v304_v23 = vand.u32 15, %v2052_v26  ;;  %v1878_v31 = vld [vmem:[%s2633_s2 + $0x28] sm:$0xff]  }
  0x20   : > { %776 = vmatprep.subr.bf16.mxu0 %v1808_v25 }
  0x21   : > { %vm396_vm9 = vcmp.ne.s32.totalorder %v304_v23, 0  ;;  %v1872_v23 = vld [vmem:[%s2633_s2 + $0x18] sm:$0xff]  }
  0x22   : > { %848 = vmatpush1.bf16.msra.mxu1 %v1849_v44  ;;  %vm2228_vm10 = vmpackc.low %vm1926_vm3, %vm396_vm9 }
  0x23   : > { %777 = vmatpush1.bf16.msra.mxu0 %v1810_v28  ;;  %849 = vmatprep.subr.bf16.mxu1 %v1853_v50  ;;  %v1858_v28 = vld [vmem:[%s2632_s1 + $0xf0] ss:$8 sps:$4 sm:$0xff]   ;;  %v469_v50 = vpack.c.bf16 %v2138_v58, %v2126_v54 }
  0x24   : > { %778 = vmatprep.subr.bf16.mxu0 %v1814_v30  ;;  %v428_v30 = vsel %vm420_vm7, %v419_v20, %v412_v18  ;;  %v2330_v18 = vld [vmem:[%s2633_s2 + $0xa0] sm:$0xff]  }
  0x25   : > { %v1586_v33 = vpack.c.bf16 %v427_v29, %v428_v30  ;;  %v2369_v29 = vld [vmem:[%s2633_s2 + $0xb8] sm:$0xff]   ;;  %v1877_v30 = vld [vmem:[%s2633_s2 + $0x68] sm:$0xff]  }
  0x26   : > { %850 = vmatpush1.bf16.msra.mxu1 %v1855_v51  ;;  %v416_v51 = vrot.slane %v2126_v54, 7 }
  0x27   : > { %779 = vmatpush1.bf16.msra.mxu0 %v1816_v32  ;;  %v294_v32 = vadd.s32 16, %v2052_v26 }
  0x28   : > { %780 = vmatprep.subr.bf16.mxu0 %v1820_v35  ;;  %v453_v35 = vsel %vm445_vm0, %v444_v27, %v437_v45  ;;  %v1874_v27 = vld [vmem:[%s2633_s2 + $0x60] sm:$0xff]  }
  0x29   : > { %1599 = vmatmul.mubr.msk.bf16.vlgmr.msra.gmra.mrb[0].mxu1 %vm2144_vm4, %v1598_v1  ;;  %v318_v42 = vand.u32 15, %v294_v32  ;;  %v1607_v43 = vpack.c.bf16 %v453_v35, %v446_v34  ;;  %v418_v1 = vrot.slane %v2141_v60, 7  ;;  %v1879_v32 = vld [vmem:[%s2633_s2 + $0x70] sm:$0xff]   ;;  %v1881_v34 = vld [vmem:[%s2633_s2 + $0x78] sm:$0xff]  }
  0x2a   : > { %877 = vmatprep.mubr.bf16.mxu1 %v1925_v2  ;;  %v1882_v35 = vld [vmem:[%s2633_s2 + $0x38] sm:$0xff]  }
  0x2b   : > { %781 = vmatpush1.bf16.msra.mxu0 %v1822_v40  ;;  %v466_v40 = vpack.c.bf16 %v2120_v52, %v2095_v39  ;;  %vm398_vm13 = vcmp.ne.s32.totalorder %v318_v42, 0  ;;  %v421_v5 = vsel %vm420_vm7, %v418_v1, %v419_v20  ;;  %v1869_v20 = vld [vmem:[%s2633_s2 + $0x10] sm:$0xff]  }
  0x2c   : > { %782 = vmatprep.subr.bf16.mxu0 %v1826_v49  ;;  %vm2251_vm14 = vmpackc.low %vm1926_vm3, %vm398_vm13 }
  0x2f   : > { %783 = vmatpush1.bf16.msra.mxu0 %v1828_v53  ;;  %v417_v53 = vrot.slane %v2138_v58, 7 }
  0x30   : > { %784 = vmatprep.subr.bf16.mxu0 %v1832_v55  ;;  %v332_v55 = vand.u32 15, %v296_v47 }
  0x31   : > { %1602 = vmatmul.mubr.msk.bf16.gmra.mrb[4].mxu1 %vm2157_vm5, %v1601_v12  ;;  %v423_v56 = vsel %vm420_vm7, %v416_v51, %v417_v53  ;;  %v422_v6 = vsel %vm420_vm7, %v417_v53, %v418_v1  ;;  %v1862_v12 = vld [vmem:[%s2633_s2 + $0x40] sm:$0xff]   ;;  %v916_v53 = vsub.s32 1, %v2052_v26 }
  0x32   : > { %887 = vmatprep.mubr.bf16.mxu1 %v1925_v2  ;;  %vm400_vm15 = vcmp.ne.s32.totalorder %v332_v55, 0  ;;  %1669 = vmatprep.subr.bf16.mxu1 %v1862_v12 }
  0x33   : > { %785 = vmatpush1.bf16.msra.mxu0 %v1834_v0  ;;  %vm2267_vm1 = vmpackc.low %vm1926_vm3, %vm400_vm15  ;;  %v472_v0 = vpack.c.bf16 %v2183_v14, %v2141_v60 }
  0x34   : > { %786 = vmatprep.subr.bf16.mxu0 %v1838_v3  ;;  %v346_v3 = vand.u32 15, %v298_v59 }
  0x36   : > { %vm402_vm2 = vcmp.ne.s32.totalorder %v346_v3, 0 }
  0x37   : > { %787 = vmatpush1.bf16.msra.mxu0 %v1840_v7  ;;  %v1595_v7 = vpack.c.bf16 %v421_v5, %v422_v6  ;;  %vm2281_vm6 = vmpackc.low %vm1926_vm3, %vm402_vm2 }
  0x38   : > { %788 = vmatprep.subr.bf16.mxu0 %v1844_v8 }
  0x39   : > { %1605 = vmatmul.mubr.msk.bf16.gmra.mrb[8].mxu1 %vm2205_vm8, %v1604_v24  ;;  %v2356_v24 = vld [vmem:[%s2633_s2 + $0xb0] sm:$0xff]  }
  0x3a   : > { %897 = vmatprep.mubr.bf16.mxu1 %v1925_v2  ;;  %v415_v2 = vrot.slane %v2120_v52, 7 }
  0x3b   : > { %789 = vmatpush1.bf16.msra.mxu0 %v1846_v11  ;;  %v2304_v11 = vld [vmem:[%s2633_s2 + $0x90] sm:$0xff]  }
  0x3c   : > { %790 = vmatprep.subr.bf16.mxu0 %v1850_v13  ;;  %v425_v45 = vsel %vm420_vm7, %v414_v41, %v415_v2  ;;  %v424_v57 = vsel %vm420_vm7, %v415_v2, %v416_v51  ;;  %v1863_v13 = vld [vmem:[%s2633_s2] sm:$0xff]  }
  0x3d   : > { %v1589_v48 = vpack.c.bf16 %v425_v45, %v426_v46  ;;  %v1592_v62 = vpack.c.bf16 %v423_v56, %v424_v57  ;;  %1670 = vmatpush3.bf16.msra.mxu1 %v1863_v13  ;;  %v908_v51 = vld [vmem:[%s2634_s3] sm:$0x3] }
  0x3e   : > { %1671 = vmatprep.subr.bf16.mxu1 %v1865_v16  ;;  %v936_v57 = vld [vmem:[%s2635_s4] sm:$0x3]  ;;  %v2406_v1 = vrot.slane %v908_v51, %v916_v53 }
  0x3f   : > { %791 = vmatpush1.bf16.msra.mxu0 %v1852_v17  ;;  %v1866_v17 = vld [vmem:[%s2633_s2 + $0x8] sm:$0xff]   ;;  %v2410_v12 = vrot.slane %v936_v57, %v916_v53 }
  0x40   : > { %792 = vmatprep.subr.bf16.mxu0 %v1856_v22  ;;  %v1871_v22 = vld [vmem:[%s2633_s2 + $0x58] sm:$0xff]  }
  0x41   : > { %1608 = vmatmul.mubr.msk.bf16.gmra.mrb[12].mxu1 %vm2239_vm12, %v1607_v43 }
  0x42   : > { %1672 = vmatpush3.bf16.msra.mxu1 %v1866_v17 }
  0x43   : > { %793 = vmatpush1.bf16.msra.mxu0 %v1858_v28  ;;  %1673 = vmatprep.subr.bf16.mxu1 %v1868_v19  ;;  %v1875_v28 = vld [vmem:[%s2633_s2 + $0x20] sm:$0xff]  }
  0x44   : > { %1721 = vmatprep.subr.bf16.mxu0 %v2290_v9 }
  0x46   : > { %1587 = vmatmul.mubr.msk.bf16.vlgmr.msra.gmra.mrb[0].mxu0 %vm2228_vm10, %v1586_v33  ;;  %1674 = vmatpush3.bf16.msra.mxu1 %v1869_v20  ;;  %v1880_v33 = vld [vmem:[%s2633_s2 + $0x30] sm:$0xff]  }
  0x47   : > { %804 = vmatprep.mubr.bf16.mxu0 %v466_v40  ;;  %1722 = vmatpush3.bf16.msra.mxu0 %v2290_v9 }
  0x48   : > { %1723 = vmatprep.subr.bf16.mxu0 %v2297_v10  ;;  %1675 = vmatprep.subr.bf16.mxu1 %v1871_v22 }
  0x4a   : > { %1676 = vmatpush3.bf16.msra.mxu1 %v1872_v23 }
  0x4b   : > { %1724 = vmatpush3.bf16.msra.mxu0 %v2297_v10  ;;  %1677 = vmatprep.subr.bf16.mxu1 %v1874_v27 }
  0x4c   : > { %1725 = vmatprep.subr.bf16.mxu0 %v2304_v11 }
  0x4e   : > { %1590 = vmatmul.mubr.msk.bf16.gmra.mrb[4].mxu0 %vm2251_vm14, %v1589_v48  ;;  %1678 = vmatpush3.bf16.msra.mxu1 %v1875_v28  ;;  %v912_v48 = vsub.s32 0, %v2052_v26 }
  0x4f   : > { %814 = vmatprep.mubr.bf16.mxu0 %v469_v50  ;;  %1726 = vmatpush3.bf16.msra.mxu0 %v2304_v11 }
  0x50   : > { %1727 = vmatprep.subr.bf16.mxu0 %v2317_v15  ;;  %1679 = vmatprep.subr.bf16.mxu1 %v1877_v30  ;;  %v2408_v5 = vrot.slane %v936_v57, %v912_v48 }
  0x52   : > { %1680 = vmatpush3.bf16.msra.mxu1 %v1878_v31 }
  0x53   : > { %1728 = vmatpush3.bf16.msra.mxu0 %v2317_v15  ;;  %1681 = vmatprep.subr.bf16.mxu1 %v1879_v32 }
  0x54   : > { %1729 = vmatprep.subr.bf16.mxu0 %v2330_v18 }
  0x56   : > { %1593 = vmatmul.mubr.msk.bf16.gmra.mrb[8].mxu0 %vm2267_vm1, %v1592_v62  ;;  %1682 = vmatpush3.bf16.msra.mxu1 %v1880_v33  ;;  %v2404_v62 = vrot.slane %v908_v51, %v912_v48 }
  0x57   : > { %824 = vmatprep.mubr.bf16.mxu0 %v472_v0  ;;  %1730 = vmatpush3.bf16.msra.mxu0 %v2330_v18 }
  0x58   : > { %1731 = vmatprep.subr.bf16.mxu0 %v2343_v21  ;;  %1683 = vmatprep.subr.bf16.mxu1 %v1881_v34 }
  0x5a   : > { %1684 = vmatpush3.bf16.msra.mxu1 %v1882_v35 }
  0x5b   : > { %1732 = vmatpush3.bf16.msra.mxu0 %v2343_v21  ;;  %1745 = vmatprep.subr.bf16.mxu1 %v2290_v9 }
  0x5c   : > { %1733 = vmatprep.subr.bf16.mxu0 %v2356_v24 }
  0x5e   : > { %1596 = vmatmul.mubr.msk.bf16.gmra.mrb[12].mxu0 %vm2281_vm6, %v1595_v7 }
  0x5f   : > { %1734 = vmatpush3.bf16.msra.mxu0 %v2356_v24 }
  0x60   : > { %1735 = vmatprep.subr.bf16.mxu0 %v2369_v29 }
  0x63   : > { %1736 = vmatpush3.bf16.msra.mxu0 %v2369_v29 }
  0xfc   : > { %v869_v40 = vpop.f32.mrb[0].mxu1 }
  0xfd   : > { %v871_v41 = vpop.f32.mrb[1].mxu1 }
  0xfe   : > { %v873_v2 = vpop.f32.mrb[2].mxu1 }
  0xff   : > { %v875_v42 = vpop.f32.mrb[3].mxu1 }
 0x104   : > { %v879_v43 = vpop.f32.mrb[4].mxu1 }
 0x105   : > { %v881_v45 = vpop.f32.mrb[5].mxu1 }
 0x106   : > { %v883_v46 = vpop.f32.mrb[6].mxu1 }
 0x107   : > { %v885_v47 = vpop.f32.mrb[7].mxu1 }
 0x10c   : > { %v889_v50 = vpop.f32.mrb[8].mxu1 }
 0x10d   : > { %v891_v55 = vpop.f32.mrb[9].mxu1 }
 0x10e   : > { %v2397_v56 = vpop.f32.mrb[10].mxu1 }
 0x10f   : > { %v2402_v59 = vpop.f32.mrb[11].mxu1 }
 0x114   : > { %v2413_v20 = vpop.f32.mrb[12].mxu1 }
 0x115   : > { %v2416_v27 = vpop.f32.mrb[13].mxu1 }
 0x116   : > { %v2420_v31 = vpop.f32.mrb[14].mxu1 }
 0x117   : > { %v2426_v34 = vpop.f32.mrb[15].mxu1 }
 0x119   : > { %v796_v0 = vpop.f32.mrb[0].mxu0 }
 0x11a   : > { %v870_v3 = vadd.f32 %v869_v40, %v796_v0  ;;  %v798_v6 = vpop.f32.mrb[1].mxu0 }
 0x11b   : > { %v872_v7 = vadd.f32 %v871_v41, %v798_v6  ;;  %v800_v13 = vpop.f32.mrb[2].mxu0 }
 0x11c   : > { %v920_v16 = vmul.f32 %v2404_v62, %v870_v3  ;;  %v874_v17 = vadd.f32 %v873_v2, %v800_v13  ;;  %v802_v19 = vpop.f32.mrb[3].mxu0 }
 0x11d   : > { %v921_v22 = vmul.f32 %v2406_v1, %v872_v7  ;;  %v876_v23 = vadd.f32 %v875_v42, %v802_v19 }
 0x11e   : > { %v948_v28 = vadd.f32 %v2408_v5, %v920_v16  ;;  %v922_v30 = vmul.f32 %v2404_v62, %v874_v17 }
 0x11f   : > { %v2423_v32 = vadd.f32 %v2410_v12, %v921_v22  ;;  %v923_v33 = vmul.f32 %v2406_v1, %v876_v23 }
 0x120   : > { %v2428_v35 = vmax.f32 %v948_v28, 0.0  ;;  %v950_v40 = vadd.f32 %v2408_v5, %v922_v30 }
 0x121   : > { %v2432_v41 = vadd.f32 %v2410_v12, %v923_v33  ;;  %v806_v2 = vpop.f32.mrb[4].mxu0  ;;  %v1609_v26 = vmul.f32 -1.442695, %v2423_v32 }
 0x122   : > { %v965_v42 = vmax.f32 %v950_v40, 0.0  ;;  %v880_v48 = vadd.f32 %v879_v43, %v806_v2  ;;  %v808_v51 = vpop.f32.mrb[5].mxu0  ;;  %v2640_v53 = vrot.slane %v2428_v35, 7  ;;  %v2639_v57 = vrot.slane %v2428_v35, 1 }
 0x123   : > { %v882_v0 = vadd.f32 %v881_v45, %v808_v51  ;;  %v810_v3 = vpop.f32.mrb[6].mxu0  ;;  %v1610_v36 = vmul.f32 -1.442695, %v2432_v41  ;;  %1883 = vpow2.f32 %v1609_v26  ;;  %v2570_v41 = vld [vmem:[%s2636_s5] ss:$0 sm:$0xff] }
 0x124   : > { %v1021_v6 = vrot.slane %v965_v42, 7  ;;  %v1045_v7 = vrot.slane %v965_v42, 1  ;;  %v924_v13 = vmul.f32 %v2404_v62, %v880_v48  ;;  %v884_v16 = vadd.f32 %v883_v46, %v810_v3  ;;  %v812_v17 = vpop.f32.mrb[7].mxu0 }
 0x125   : > { %v925_v19 = vmul.f32 %v2406_v1, %v882_v0  ;;  %v886_v22 = vadd.f32 %v885_v47, %v812_v17  ;;  %v1069_v23 = vpack.c.bf16 %v965_v42, %v2428_v35  ;;  %1885 = vpow2.f32 %v1610_v36 }
 0x126   : > { %v2443_v43 = vsel %vm420_vm7, %v2640_v53, %v1021_v6  ;;  %v952_v45 = vadd.f32 %v2408_v5, %v924_v13  ;;  %v926_v28 = vmul.f32 %v2404_v62, %v884_v16  ;;  %v1058_v46 = vsel %vm445_vm0, %v2639_v57, %v1045_v7 }
 0x127   : > { %v2452_v30 = vadd.f32 %v2410_v12, %v925_v19  ;;  %v927_v47 = vmul.f32 %v2406_v1, %v886_v22  ;;  %1304 = vmatprep.mubr.bf16.mxu1 %v1069_v23 }
 0x128   : > { %v2455_v33 = vmax.f32 %v952_v45, 0.0  ;;  %v954_v40 = vadd.f32 %v2408_v5, %v926_v28 }
 0x129   : > { %v2459_v2 = vadd.f32 %v2410_v12, %v927_v47  ;;  %v816_v42 = vpop.f32.mrb[8].mxu0  ;;  %v1611_v49 = vmul.f32 -1.442695, %v2452_v30 }
 0x12a   : > { %v1046_v48 = vrot.slane %v2455_v33, 1  ;;  %v2462_v51 = vmax.f32 %v954_v40, 0.0  ;;  %v890_v0 = vadd.f32 %v889_v50, %v816_v42  ;;  %v818_v3 = vpop.f32.mrb[9].mxu0  ;;  %v1022_v17 = vrot.slane %v2455_v33, 7 }
 0x12b   : > { %v892_v13 = vadd.f32 %v891_v55, %v818_v3  ;;  %v820_v16 = vpop.f32.mrb[10].mxu0  ;;  %v1612_v63 = vmul.f32 -1.442695, %v2459_v2  ;;  %1887 = vpow2.f32 %v1611_v49 }
 0x12c   : > { %v1047_v19 = vrot.slane %v2462_v51, 1  ;;  %v928_v22 = vmul.f32 %v2404_v62, %v890_v0  ;;  %v894_v23 = vadd.f32 %v2397_v56, %v820_v16  ;;  %v822_v45 = vpop.f32.mrb[11].mxu0  ;;  %v1023_v28 = vrot.slane %v2462_v51, 7 }
 0x12d   : > { %v929_v47 = vmul.f32 %v2406_v1, %v892_v13  ;;  %v896_v40 = vadd.f32 %v2402_v59, %v822_v45  ;;  %v1057_v50 = vsel %vm445_vm0, %v1045_v7, %v1046_v48  ;;  %v1072_v13 = vpack.c.bf16 %v2462_v51, %v2455_v33 }
 0x12e   : > { %v1056_v55 = vsel %vm445_vm0, %v1046_v48, %v1047_v19  ;;  %v956_v42 = vadd.f32 %v2408_v5, %v928_v22  ;;  %v930_v3 = vmul.f32 %v2404_v62, %v894_v23  ;;  %v1654_v16 = vpack.c.bf16 %v1057_v50, %v1058_v46 }
 0x12f   : > { %v2478_v0 = vadd.f32 %v2410_v12, %v929_v47  ;;  %v931_v56 = vmul.f32 %v2406_v1, %v896_v40  ;;  %v1032_v22 = vsel %vm420_vm7, %v1022_v17, %v1023_v28  ;;  %v1033_v23 = vsel %vm420_vm7, %v1021_v6, %v1022_v17 }
 0x130   : > { %v968_v59 = vmax.f32 %v956_v42, 0.0  ;;  %v958_v45 = vadd.f32 %v2408_v5, %v930_v3  ;;  %1737 = vmatprep.mubr.msk.bf16.mxu0 %vm2144_vm4, %v1654_v16  ;;  %1889 = vpow2.f32 %v1612_v63 }
 0x131   : > { %v2485_v7 = vadd.f32 %v2410_v12, %v931_v56  ;;  %v826_v48 = vpop.f32.mrb[12].mxu0  ;;  %v1613_v2 = vmul.f32 -1.442695, %v2478_v0 }
 0x132   : > { %v1048_v46 = vrot.slane %v968_v59, 1  ;;  %v969_v47 = vmax.f32 %v958_v45, 0.0  ;;  %v828_v40 = vpop.f32.mrb[13].mxu0  ;;  %v900_v33 = vadd.f32 %v2413_v20, %v826_v48  ;;  %v1024_v42 = vrot.slane %v968_v59, 7 }
 0x133   : > { %v902_v51 = vadd.f32 %v2416_v27, %v828_v40  ;;  %v830_v50 = vpop.f32.mrb[14].mxu0  ;;  %v1645_v27 = vpack.c.bf16 %v1032_v22, %v1033_v23 }
 0x134   : > { %v1055_v61 = vsel %vm445_vm0, %v1047_v19, %v1048_v46  ;;  %v1025_v3 = vrot.slane %v969_v47, 7  ;;  %v904_v56 = vadd.f32 %v2420_v31, %v830_v50  ;;  %v832_v16 = vpop.f32.mrb[15].mxu0  ;;  %v1049_v53 = vrot.slane %v969_v47, 1 }
 0x135   : > { %v1657_v57 = vpack.c.bf16 %v1055_v61, %v1056_v55  ;;  %v932_v6 = vmul.f32 %v2404_v62, %v900_v33  ;;  %v933_v17 = vmul.f32 %v2406_v1, %v902_v51  ;;  %v906_v20 = vadd.f32 %v2426_v34, %v832_v16 }
 0x136   : > { %v934_v45 = vmul.f32 %v2404_v62, %v904_v56  ;;  %v1075_v31 = vpack.c.bf16 %v969_v47, %v968_v59  ;;  %v1030_v19 = vsel %vm420_vm7, %v1024_v42, %v1025_v3  ;;  %v1031_v34 = vsel %vm420_vm7, %v1023_v28, %v1024_v42 }
 0x137   : > { %v960_v48 = vadd.f32 %v2408_v5, %v932_v6  ;;  %v2504_v40 = vadd.f32 %v2410_v12, %v933_v17  ;;  %1738 = vmatmul.mubr.msk.bf16.vlgmr.msra.gmra.mrb[16].mxu0 %vm2157_vm5, %v1657_v57  ;;  %v935_v33 = vmul.f32 %v2406_v1, %v906_v20  ;;  %v1054_v22 = vsel %vm445_vm0, %v1048_v46, %v1049_v53 }
 0x138   : > { %v962_v55 = vadd.f32 %v2408_v5, %v934_v45  ;;  %v1648_v4 = vpack.c.bf16 %v1030_v19, %v1031_v34  ;;  %v2657_v28 = vrot.slane %v2428_v35, 7  ;;  %v2658_v42 = vrot.slane %v2428_v35, 1 }
 0x139   : > { %v970_v62 = vmax.f32 %v960_v48, 0.0  ;;  %v2517_v51 = vadd.f32 %v2410_v12, %v935_v33  ;;  %v1614_v48 = vmul.f32 -1.442695, %v2485_v7  ;;  %v1615_v34 = vmul.f32 -1.442695, %v2504_v40 }
 0x13a   : > { %v971_v23 = vmax.f32 %v962_v55, 0.0 }
 0x13b   : > { %v1026_v57 = vrot.slane %v970_v62, 7  ;;  %v1050_v59 = vrot.slane %v970_v62, 1 }
 0x13c   : > { %v1027_v47 = vrot.slane %v971_v23, 7  ;;  %v1051_v50 = vrot.slane %v971_v23, 1  ;;  %v1078_v61 = vpack.c.bf16 %v971_v23, %v970_v62 }
 0x13d   : > { %v1029_v1 = vsel %vm420_vm7, %v1025_v3, %v1026_v57  ;;  %v1053_v5 = vsel %vm445_vm0, %v1049_v53, %v1050_v59 }
 0x13e   : > { %v1035_v46 = vsel %vm420_vm7, %v1027_v47, %v2657_v28  ;;  %v1052_v12 = vsel %vm445_vm0, %v1050_v59, %v1051_v50  ;;  %v1059_v56 = vsel %vm445_vm0, %v1051_v50, %v2658_v42  ;;  %v1028_v3 = vsel %vm420_vm7, %v1026_v57, %v1027_v47 }
 0x13f   : > { %v1642_v16 = vpack.c.bf16 %v2443_v43, %v1035_v46  ;;  %v1663_v6 = vpack.c.bf16 %v1059_v56, %v1052_v12  ;;  %v1651_v53 = vpack.c.bf16 %v1028_v3, %v1029_v1  ;;  %v1660_v17 = vpack.c.bf16 %v1053_v5, %v1054_v22 }
 0x140   : > { %v1616_v47 = vmul.f32 -1.442695, %v2517_v51 }
 0x141   : > { %1643 = vmatmul.mubr.msk.bf16.vlgmr.msra.gmra.mrb[16].mxu1 %vm2228_vm10, %v1642_v16 }
 0x142   : > { %1753 = vmatpush3.bf16.msra.mxu1 %v2290_v9  ;;  %1312 = vmatprep.mubr.bf16.mxu1 %v1072_v13 }
 0x143   : > { %1746 = vmatprep.subr.bf16.mxu1 %v2297_v10 }
 0x146   : > { %1754 = vmatpush3.bf16.msra.mxu1 %v2297_v10 }
 0x147   : > { %1747 = vmatprep.subr.bf16.mxu1 %v2304_v11 }
 0x149   : > { %1646 = vmatmul.mubr.msk.bf16.gmra.mrb[20].mxu1 %vm2251_vm14, %v1645_v27  ;;  %v2576_v27 = vld [vmem:[%s2637_s6] ss:$0 sm:$0xff] }
 0x14a   : > { %1755 = vmatpush3.bf16.msra.mxu1 %v2304_v11  ;;  %1320 = vmatprep.mubr.bf16.mxu1 %v1075_v31  ;;  %v1884_v11 = vpop.eup %1883 }
 0x14b   : > { %1748 = vmatprep.subr.bf16.mxu1 %v2317_v15  ;;  %v996_v44 = vadd.f32 1.0, %v1884_v11 }
 0x14d   : > { %1891 = vrcp.f32 %v996_v44 }
 0x14e   : > { %1756 = vmatpush3.bf16.msra.mxu1 %v2317_v15  ;;  %v1886_v15 = vpop.eup %1885 }
 0x14f   : > { %1749 = vmatprep.subr.bf16.mxu1 %v2330_v18 }
 0x151   : > { %1649 = vmatmul.mubr.msk.bf16.gmra.mrb[24].mxu1 %vm2267_vm1, %v1648_v4 }
 0x152   : > { %1757 = vmatpush3.bf16.msra.mxu1 %v2330_v18  ;;  %1328 = vmatprep.mubr.bf16.mxu1 %v1078_v61  ;;  %v997_v18 = vadd.f32 1.0, %v1886_v15 }
 0x153   : > { %1750 = vmatprep.subr.bf16.mxu1 %v2343_v21 }
 0x154   : > { %1893 = vrcp.f32 %v997_v18 }
 0x155   : > { %1895 = vpow2.f32 %v1613_v2 }
 0x156   : > { %1758 = vmatpush3.bf16.msra.mxu1 %v2343_v21 }
 0x157   : > { %1751 = vmatprep.subr.bf16.mxu1 %v2356_v24 }
 0x159   : > { %1652 = vmatmul.mubr.msk.bf16.gmra.mrb[28].mxu1 %vm2281_vm6, %v1651_v53 }
 0x15a   : > { %1759 = vmatpush3.bf16.msra.mxu1 %v2356_v24  ;;  %1741 = vmatprep.mubr.msk.bf16.mxu1 %vm2205_vm8, %v1660_v17 }
 0x15b   : > { %1752 = vmatprep.subr.bf16.mxu1 %v2369_v29 }
 0x15e   : > { %1760 = vmatpush3.bf16.msra.mxu1 %v2369_v29  ;;  %v1888_v29 = vpop.eup %1887 }
 0x15f   : > { %v1890_v30 = vpop.eup %1889  ;;  %v998_v20 = vadd.f32 1.0, %v1888_v29 }
 0x160   : > { %v999_v55 = vadd.f32 1.0, %v1890_v30  ;;  %v1892_v59 = vpop.eup %1891 }
 0x161   : > { %1742 = vmatmul.mubr.msk.bf16.vlgmr.msra.gmra.mrb[32].mxu1 %vm2239_vm12, %v1663_v6  ;;  %1897 = vrcp.f32 %v998_v20  ;;  %v1894_v40 = vpop.eup %1893 }
 0x162   : > { %1899 = vpow2.f32 %v1614_v48  ;;  %v1896_v17 = vpop.eup %1895 }
 0x163   : > { %1901 = vrcp.f32 %v999_v55  ;;  %v1000_v48 = vadd.f32 1.0, %v1896_v17 }
 0x164   : > { %1903 = vpow2.f32 %v1615_v34 }
 0x165   : > { %1905 = vpow2.f32 %v1616_v47 }
 0x20a   : > { %v1739_v8 = vpop.f32.mrb[16].mxu0 }
 0x20b   : > { %v1371_v25 = vpop.f32.mrb[17].mxu0 }
 0x20c   : > { %v1740_v9 = vpop.f32.mrb[18].mxu0 }
 0x20d   : > { %v1374_v10 = vpop.f32.mrb[19].mxu0 }
 0x214   : > { %v1685_v21 = vpop.f32.mrb[16].mxu1 }
 0x215   : > { %v1686_v24 = vpop.f32.mrb[17].mxu1 }
 0x216   : > { %v1687_v32 = vadd.f32 %v1686_v24, %v1685_v21  ;;  %v1688_v35 = vpop.f32.mrb[18].mxu1 }
 0x217   : > { %v1689_v43 = vpop.f32.mrb[19].mxu1 }
 0x218   : > { %v1372_v13 = vadd.f32 %v1687_v32, %v1371_v25  ;;  %v1690_v45 = vadd.f32 %v1689_v43, %v1688_v35  ;;  %v1898_v25 = vpop.eup %1897 }
 0x21a   : > { %v1409_v31 = vmul.f32 %v2570_v41, %v1372_v13  ;;  %v1375_v19 = vadd.f32 %v1690_v45, %v1374_v10  ;;  %v1900_v10 = vpop.eup %1899 }
 0x21b   : > { %v1902_v44 = vpop.eup %1901 }
 0x21c   : > { %v1424_v33 = vadd.f32 %v2576_v27, %v1409_v31  ;;  %v1410_v62 = vmul.f32 %v2570_v41, %v1375_v19  ;;  %v1691_v0 = vpop.f32.mrb[20].mxu1  ;;  %v1904_v24 = vpop.eup %1903 }
 0x21d   : > { %v1692_v22 = vpop.f32.mrb[21].mxu1  ;;  %v1906_v43 = vpop.eup %1905  ;;  %v1002_v2 = vadd.f32 1.0, %v1904_v24 }
 0x21e   : > { %v1432_v23 = vsub.f32 %v1424_v33, %v2089_v37  ;;  %v1425_v4 = vadd.f32 %v2576_v27, %v1410_v62  ;;  %v1693_v7 = vadd.f32 %v1692_v22, %v1691_v0  ;;  %v1694_v57 = vpop.f32.mrb[22].mxu1  ;;  %v1003_v19 = vadd.f32 1.0, %v1906_v43 }
 0x21f   : > { %v1695_v50 = vpop.f32.mrb[23].mxu1  ;;  %1907 = vrcp.f32 %v1002_v2 }
 0x220   : > { %v1440_v61 = vmul.f32 %v1892_v59, %v1432_v23  ;;  %v1433_v1 = vsub.f32 %v1425_v4, %v2092_v38  ;;  %v1380_v5 = vadd.f32 %v1739_v8, %v1693_v7  ;;  %v1696_v28 = vadd.f32 %v1695_v50, %v1694_v57 }
 0x221   : > { %1909 = vrcp.f32 %v1000_v48 }
 0x222   : > { %v1448_v46 = vadd.f32 %v1440_v61, %v2089_v37  ;;  %v1441_v12 = vmul.f32 %v1894_v40, %v1433_v1  ;;  %v1411_v42 = vmul.f32 %v2570_v41, %v1380_v5  ;;  %v1383_v56 = vadd.f32 %v1740_v9, %v1696_v28 }
 0x223   : > { %1911 = vrcp.f32 %v1003_v19 }
 0x224   : > { %v1456_v51 = vmax.f32 %v1448_v46, 0.0  ;;  %v1449_v16 = vadd.f32 %v1441_v12, %v2092_v38  ;;  %v1426_v6 = vadd.f32 %v2576_v27, %v1411_v42  ;;  %v1412_v37 = vmul.f32 %v2570_v41, %v1383_v56  ;;  %v1697_v3 = vpop.f32.mrb[24].mxu1 }
 0x225   : > { %v1698_v53 = vpop.f32.mrb[25].mxu1 }
 0x226   : > { %1464 = vst [vmem:[%s2594_s26] sm:$0xff] %v1456_v51  ;;  %v1457_v26 = vmax.f32 %v1449_v16, 0.0  ;;  %v1434_v36 = vsub.f32 %v1426_v6, %v2095_v39  ;;  %v1427_v49 = vadd.f32 %v2576_v27, %v1412_v37  ;;  %v1699_v63 = vadd.f32 %v1698_v53, %v1697_v3  ;;  %v1700_v8 = vpop.f32.mrb[26].mxu1 }
 0x227   : > { %v1701_v9 = vpop.f32.mrb[27].mxu1 }
 0x228   : > { %1465 = vst [vmem:[%s2594_s26 + $0x8] sm:$0xff] %v1457_v26  ;;  %v1442_v38 = vmul.f32 %v1898_v25, %v1434_v36  ;;  %v1435_v11 = vsub.f32 %v1427_v49, %v2120_v52  ;;  %v1702_v15 = vadd.f32 %v1701_v9, %v1700_v8  ;;  %v1916_v49 = vld [vmem:[%s2072_s20 + $0x28] sm:$0xff] }
 0x229   : > { %v1908_v28 = vpop.eup %1907 }
 0x22a   : > { %v1450_v18 = vadd.f32 %v1442_v38, %v2095_v39  ;;  %v1443_v21 = vmul.f32 %v1902_v44, %v1435_v11  ;;  %v1001_v39 = vadd.f32 1.0, %v1900_v10 }
 0x22b   : > { %v1910_v12 = vpop.eup %1909 }
 0x22c   : > { %v1458_v29 = vmax.f32 %v1450_v18, 0.0  ;;  %v1451_v32 = vadd.f32 %v1443_v21, %v2120_v52  ;;  %v1703_v35 = vpop.f32.mrb[28].mxu1  ;;  %1913 = vrcp.f32 %v1001_v39 }
 0x22d   : > { %v1704_v30 = vpop.f32.mrb[29].mxu1  ;;  %v1912_v51 = vpop.eup %1911 }
 0x22e   : > { %1466 = vst [vmem:[%s2594_s26 + $0x10] sm:$0xff] %v1458_v29  ;;  %v1459_v13 = vmax.f32 %v1451_v32, 0.0  ;;  %v1705_v45 = vadd.f32 %v1704_v30, %v1703_v35  ;;  %v1706_v20 = vpop.f32.mrb[30].mxu1 }
 0x22f   : > { %v1707_v31 = vpop.f32.mrb[31].mxu1 }
 0x230   : > { %1467 = vst [vmem:[%s2594_s26 + $0x18] sm:$0xff] %v1459_v13  ;;  %v1708_v55 = vadd.f32 %v1707_v31, %v1706_v20 }
 0x234   : > { %v1743_v33 = vpop.f32.mrb[32].mxu1 }
 0x235   : > { %v1396_v52 = vadd.f32 %v1743_v33, %v1705_v45  ;;  %v1387_v62 = vpop.f32.mrb[33].mxu1 }
 0x236   : > { %v1388_v0 = vadd.f32 %v1699_v63, %v1387_v62  ;;  %v1744_v34 = vpop.f32.mrb[34].mxu1  ;;  %v1914_v6 = vpop.eup %1913 }
 0x237   : > { %v1415_v22 = vmul.f32 %v2570_v41, %v1396_v52  ;;  %v1399_v23 = vadd.f32 %v1744_v34, %v1708_v55  ;;  %v1390_v4 = vpop.f32.mrb[35].mxu1 }
 0x238   : > { %v1413_v7 = vmul.f32 %v2570_v41, %v1388_v0  ;;  %v1391_v57 = vadd.f32 %v1702_v15, %v1390_v4 }
 0x239   : > { %v1430_v59 = vadd.f32 %v2576_v27, %v1415_v22  ;;  %v1416_v47 = vmul.f32 %v2570_v41, %v1399_v23 }
 0x23a   : > { %v1428_v50 = vadd.f32 %v2576_v27, %v1413_v7  ;;  %v1414_v61 = vmul.f32 %v2570_v41, %v1391_v57 }
 0x23b   : > { %v1438_v1 = vsub.f32 %v1430_v59, %v2141_v60  ;;  %v1431_v5 = vadd.f32 %v2576_v27, %v1416_v47 }
 0x23c   : > { %v1436_v40 = vsub.f32 %v1428_v50, %v2126_v54  ;;  %v1429_v46 = vadd.f32 %v2576_v27, %v1414_v61  ;;  %v1915_v54 = vld [vmem:[%s2072_s20 + $0x20] sm:$0xff] }
 0x23d   : > { %v1446_v42 = vmul.f32 %v1908_v28, %v1438_v1  ;;  %v1439_v56 = vsub.f32 %v1431_v5, %v2183_v14 }
 0x23e   : > { %v1444_v16 = vmul.f32 %v1910_v12, %v1436_v40  ;;  %v1437_v41 = vsub.f32 %v1429_v46, %v2138_v58 }
 0x23f   : > { %v1454_v37 = vadd.f32 %v1446_v42, %v2141_v60  ;;  %v1447_v3 = vmul.f32 %v1912_v51, %v1439_v56 }
 0x240   : > { %v1452_v53 = vadd.f32 %v1915_v54, %v1444_v16  ;;  %v1445_v27 = vmul.f32 %v1914_v6, %v1437_v41 }
 0x241   : > { %v1462_v17 = vmax.f32 %v1454_v37, 0.0  ;;  %v1455_v26 = vadd.f32 %v1447_v3, %v2183_v14 }
 0x242   : > { %v1460_v36 = vmax.f32 %v1452_v53, 0.0  ;;  %v1453_v63 = vadd.f32 %v1916_v49, %v1445_v27 }
 0x243   : > { %1470 = vst [vmem:[%s2594_s26 + $0x30] sm:$0xff] %v1462_v17  ;;  %v1463_v8 = vmax.f32 %v1455_v26, 0.0 }
 0x244   : > { %1468 = vst [vmem:[%s2594_s26 + $0x20] sm:$0xff] %v1460_v36  ;;  %v1461_v25 = vmax.f32 %v1453_v63, 0.0 }
 0x245   : > { %1471 = vst [vmem:[%s2594_s26 + $0x38] sm:$0xff] %v1463_v8 }
 0x246   : > { %1469 = vst [vmem:[%s2594_s26 + $0x28] sm:$0xff] %v1461_v25 }
 0x247 PF: > { %s17_s24 = sadd.s32 1, %s1923_s24  }
 0x248   : > { %p14_p4 = scmp.ge.s32.totalorder %s17_s24, 4  }
 0x24a   :  { %16 = sbr.rel (!%p14_p4) target bundleno = 1 (0x1), region = 78 }

</bundles_post_ra>
